<compile_context>
chip_gen: v6e
topology: v6e:2x2x1
jax: 0.10.0
libtpu: 0.0.40
codegen_flags: <defaults>
</compile_context>

<pallas_src>
import functools
from typing import NamedTuple

import numpy as np
import jax
import jax.numpy as jnp
from jax.experimental import pallas as pl
from jax.experimental.pallas import tpu as pltpu


# ----------------------------------------------------------------------------
# Deterministic parameter construction (matches Amk1d.__init__), host-side f64
# ----------------------------------------------------------------------------
def hyperbolic_cross_design(deg, input_lb=-2.0, input_ub=2.0):
    """1-D dyadic design points, dyadically sorted (level-major). M = 2**deg - 1."""
    pts = []
    for lvl in range(1, deg + 1):
        for k in range(1, 2 ** (lvl - 1) + 1):
            t = (2 * k - 1) / (2 ** lvl)
            pts.append(input_lb + (input_ub - input_lb) * t)
    return np.asarray(pts, dtype=np.float64)


def mk_chol_inv(design_points_f64, lengthscale=1.0):
    """Dense float64 equivalent of dak's mk_chol_inv: R^{-1} with K = R^T R, R upper."""
    u = np.asarray(design_points_f64, dtype=np.float64)
    K = np.exp(-np.abs(u[:, None] - u[None, :]) / float(lengthscale))
    L = np.linalg.cholesky(K)                       # lower, K = L L^T
    Linv = np.linalg.solve(L, np.eye(K.shape[0]))   # L^{-1}
    return Linv.T                                   # (L^T)^{-1}, upper triangular


def _round_up(v, m):
    return -(-v // m) * m


class Amk1dParams(NamedTuple):
    u_pad: jax.Array          # (M_pad, 1) f32, design points pre-scaled by 1/ls; 1e30 sentinel pad rows
    cinv_t: jax.Array         # (M_pad, M_pad) f32, chol_inv^T zero-padded
    num_inducing: int         # M
    inv_lengthscale: float


def make_amk1d_params(design_points, chol_inv, lengthscale=1.0):
    """Build the padded kernel constants ONCE (host-side numpy)."""
    dp = np.asarray(design_points, np.float64).reshape(-1)
    ci = np.asarray(chol_inv, np.float64)
    M = dp.shape[0]
    # Multiple of 16 so the lane-dense output block is valid for both f32 and bf16 outputs.
    M_pad = max(16, _round_up(M, 16))
    inv_ls = 1.0 / float(lengthscale)
    # Sentinel rows give exp(-|x/ls - 1e30|) == 0 exactly; scale real points first
    # (so a tiny lengthscale cannot overflow the sentinel).
    u_pad = np.full((M_pad, 1), 1e30, dtype=np.float32)
    u_pad[:M, 0] = (dp * inv_ls).astype(np.float32)
    cinv_t = np.zeros((M_pad, M_pad), dtype=np.float32)
    cinv_t[:M, :M] = ci.T.astype(np.float32)
    return Amk1dParams(jnp.asarray(u_pad), jnp.asarray(cinv_t), M, inv_ls)


# ----------------------------------------------------------------------------
# Pallas kernel: lane-dense Laplace feature map + matmul with chol_inv^T
# ----------------------------------------------------------------------------
def _amk1d_kernel(x_ref, u_ref, cinv_t_ref, o_ref, *, inv_lengthscale):
    # x_ref:      (1, TR)          tile of flattened inputs, rows on the lane axis
    # u_ref:      (M_pad, 1)       padded, pre-scaled design points (sentinel rows -> phi == 0)
    # cinv_t_ref: (M_pad, M_pad)   chol_inv^T, zero-padded
    # o_ref:      (M_pad, TR)      transposed output tile: out^T = chol_inv^T @ phi^T
    x = x_ref[...]                                   # (1, TR)
    if inv_lengthscale != 1.0:
        x = x * inv_lengthscale                      # scaled once per tile (TR muls, not M_pad*TR)
    phi_t = jnp.exp(-jnp.abs(x - u_ref[...]))        # (M_pad, TR)   VPU abs + EUP exp, lane-dense
    o_ref[...] = jnp.dot(cinv_t_ref[...], phi_t,     # (M_pad, TR)   MXU
                         preferred_element_type=jnp.float32).astype(o_ref.dtype)


def amk1d_forward(x, params: Amk1dParams, *, row_tile=32768, use_pallas=None,
                  out_dtype=jnp.float32, return_transposed=False):
    """out[..., f, m] = sum_k exp(-|x[..., f] - u[k]| / ls) * chol_inv[k, m].

    If return_transposed=True, returns out^T with shape (M, *x.shape) — the
    kernel-native lane-dense layout — and skips the wrapper-side XLA transpose.
    """
    x = jnp.asarray(x, jnp.float32)
    M = params.num_inducing
    M_pad = params.u_pad.shape[0]
    R = int(np.prod(x.shape))        # leading dims and feature dim flattened to rows

    if use_pallas is None:
        use_pallas = R >= 1024       # tiny problems: XLA fusion beats kernel launch
    if not use_pallas:
        u = params.u_pad[:M, 0]
        phi = jnp.exp(-jnp.abs(x[..., None] * params.inv_lengthscale - u))
        out = (phi @ params.cinv_t[:M, :M].T).astype(out_dtype)
        if return_transposed:
            return jnp.moveaxis(out, -1, 0)
        return out

    # --- Row-tile selection (lane axis; multiples of 128) ----------------------
    R128 = _round_up(R, 128)
    TR = min(int(_round_up(max(int(row_tile), 128), 128)), R128)
    # v7x megacore: make sure the single "parallel" grid axis has >= 2 steps when
    # R is large enough so both TensorCores get work (costs nothing on 1-TC chips).
    if TR >= R128 and R128 >= 4096:
        TR = _round_up(-(-R128 // 2), 128)
    n_tiles = -(-R // TR)
    R_pad = n_tiles * TR

    x_flat = x.reshape(-1)
    if R_pad != R:
        x_flat = jnp.pad(x_flat, (0, R_pad - R))
    x2d = x_flat.reshape(1, R_pad)

    kernel = functools.partial(_amk1d_kernel,
                               inv_lengthscale=float(params.inv_lengthscale))

    out_t = pl.pallas_call(
        kernel,
        out_shape=jax.ShapeDtypeStruct((M_pad, R_pad), out_dtype),
        grid_spec=pltpu.PrefetchScalarGridSpec(
            num_scalar_prefetch=0,
            grid=(n_tiles,),
            in_specs=[
                pl.BlockSpec((1, TR), lambda i: (0, i)),            # x rows (tiled)
                pl.BlockSpec((M_pad, 1), lambda i: (0, 0)),         # design points (resident)
                pl.BlockSpec((M_pad, M_pad), lambda i: (0, 0)),     # chol_inv^T (resident)
            ],
            out_specs=pl.BlockSpec((M_pad, TR), lambda i: (0, i)),  # out^T (lane-dense)
        ),
        compiler_params=pltpu.CompilerParams(
            dimension_semantics=("parallel",)),
    )(x2d, params.u_pad, params.cinv_t)

    if return_transposed:
        # Kernel-native layout: (M, *x.shape) — no extra HBM pass.
        return out_t[:M, :R].reshape(M, *x.shape)
    out = out_t[:M, :R].T                 # (R, M); single XLA transpose in the wrapper
    return out.reshape(*x.shape, M)       # (..., F, M)


if __name__ == "__main__":
    # Module config consistent with Amk1d defaults (input_lb=-2, input_ub=2)
    in_features = 4
    n_level = 4                    # -> M = 2**4 - 1 = 15 inducing points
    batch, seq = 2, 128
    lengthscale = 1.0

    dp64 = hyperbolic_cross_design(n_level, -2.0, 2.0)        # (15,) float64
    cinv64 = mk_chol_inv(dp64, lengthscale)                   # (15, 15) float64
    params = make_amk1d_params(dp64, cinv64, lengthscale)     # padded constants, built once
    design_points = jnp.asarray(dp64, jnp.float32)
    chol_inv = jnp.asarray(cinv64, jnp.float32)

    key = jax.random.PRNGKey(0)
    x = jax.random.uniform(key, (batch, seq, in_features),
                           minval=-2.0, maxval=2.0, dtype=jnp.float32)

    # --- f32 kernel, standard (..., F, M) layout --------------------------------
    out = amk1d_forward(x, params, use_pallas=True)
    out = jax.block_until_ready(out)
    phi_ref = jnp.exp(-jnp.abs(x[..., None] - design_points) / lengthscale)
    ref = phi_ref @ chol_inv
    assert out.shape == (batch, seq, in_features, design_points.shape[0])
    np.testing.assert_allclose(np.asarray(out), np.asarray(ref), rtol=2e-3, atol=2e-3)

    # --- f32 kernel, transposed layout (no wrapper transpose) -------------------
    out_t = amk1d_forward(x, params, use_pallas=True, return_transposed=True)
    out_t = jax.block_until_ready(out_t)
    assert out_t.shape == (design_points.shape[0], batch, seq, in_features)
    np.testing.assert_allclose(np.asarray(out_t),
                               np.moveaxis(np.asarray(ref), -1, 0),
                               rtol=2e-3, atol=2e-3)

    # --- larger R exercises n_tiles >= 2 (megacore split path) ------------------
    key2 = jax.random.PRNGKey(1)
    x2 = jax.random.uniform(key2, (batch, 1024, in_features),
                            minval=-2.0, maxval=2.0, dtype=jnp.float32)
    out2 = jax.block_until_ready(amk1d_forward(x2, params, use_pallas=True))
    phi2 = jnp.exp(-jnp.abs(x2[..., None] - design_points) / lengthscale)
    ref2 = phi2 @ chol_inv
    np.testing.assert_allclose(np.asarray(out2), np.asarray(ref2), rtol=2e-3, atol=2e-3)

    # --- optional bf16-output variant (looser tolerance) ------------------------
    out_bf16 = jax.block_until_ready(
        amk1d_forward(x, params, use_pallas=True, out_dtype=jnp.bfloat16))
    np.testing.assert_allclose(np.asarray(out_bf16, dtype=np.float32),
                               np.asarray(ref), rtol=5e-2, atol=5e-2)

    print("KERNEL_OK")
</pallas_src>

<mosaic_0001>
module attributes {stable_mosaic.version = 11 : i64} {
  func.func @_amk1d_kernel(%arg0: i32, %arg1: memref<1x1024xf32, #tpu.memory_space<vmem>>, %arg2: memref<16x1xf32, #tpu.memory_space<vmem>>, %arg3: memref<16x16xf32, #tpu.memory_space<vmem>>, %arg4: memref<16x1024xf32, #tpu.memory_space<vmem>>) attributes {dimension_semantics = [#tpu.dimension_semantics<parallel>], iteration_bounds = array<i64: 1>, scalar_prefetch = 0 : i64, scratch_operands = 0 : i64, tpu.core_type = #tpu.core_type<tc>, window_params = [{transform_indices = @transform_0, window_bounds = array<i64: 1, 1024>}, {pipeline_mode = #tpu.pipeline_mode<synchronous>, transform_indices = @transform_1, window_bounds = array<i64: 16, 1>}, {pipeline_mode = #tpu.pipeline_mode<synchronous>, transform_indices = @transform_2, window_bounds = array<i64: 16, 16>}, {transform_indices = @transform_3, window_bounds = array<i64: 16, 1024>}]} {
    %c0 = arith.constant 0 : index
    %c0_0 = arith.constant 0 : index
    %0 = vector.load %arg1[%c0, %c0_0] : memref<1x1024xf32, #tpu.memory_space<vmem>>, vector<1x1024xf32>
    %c0_1 = arith.constant 0 : index
    %c0_2 = arith.constant 0 : index
    %1 = vector.load %arg2[%c0_1, %c0_2] : memref<16x1xf32, #tpu.memory_space<vmem>>, vector<16x1xf32>
    %2 = vector.broadcast %0 : vector<1x1024xf32> to vector<16x1024xf32>
    %3 = vector.broadcast %1 : vector<16x1xf32> to vector<16x1024xf32>
    %4 = arith.subf %2, %3 : vector<16x1024xf32>
    %5 = math.absf %4 : vector<16x1024xf32>
    %cst = arith.constant 0.000000e+00 : f32
    %6 = vector.broadcast %cst : f32 to vector<16x1024xf32>
    %7 = arith.subf %6, %5 : vector<16x1024xf32>
    %8 = math.exp %7 : vector<16x1024xf32>
    %c0_3 = arith.constant 0 : index
    %c0_4 = arith.constant 0 : index
    %9 = vector.load %arg3[%c0_3, %c0_4] : memref<16x16xf32, #tpu.memory_space<vmem>>, vector<16x16xf32>
    %cst_5 = arith.constant dense<0.000000e+00> : vector<16x1024xf32>
    %10 = tpu.matmul %9, %8, %cst_5 {dimension_numbers = #tpu.dot_dimension_numbers<[1], [0], [0], [1], [0, 0, 1, 1], [], []>} : vector<16x16xf32>, vector<16x1024xf32>, vector<16x1024xf32> -> vector<16x1024xf32>
    %c0_6 = arith.constant 0 : index
    %c0_7 = arith.constant 0 : index
    %11 = vector.load %arg4[%c0_6, %c0_7] : memref<16x1024xf32, #tpu.memory_space<vmem>>, vector<16x1024xf32>
    tpu.vector_store %arg4[%c0_6, %c0_7], %10 {strides = array<i32>} : memref<16x1024xf32, #tpu.memory_space<vmem>>, vector<16x1024xf32>,
    return
  }
  func.func @transform_0(%arg0: i32) -> (i32, i32) {
    %c0_i32 = arith.constant 0 : i32
    %c0_i32_0 = arith.constant 0 : i32
    return %c0_i32, %arg0 : i32, i32
  }
  func.func @transform_1(%arg0: i32) -> (i32, i32) {
    %c0_i32 = arith.constant 0 : i32
    %c0_i32_0 = arith.constant 0 : i32
    %c0_i32_1 = arith.constant 0 : i32
    return %c0_i32, %c0_i32_0 : i32, i32
  }
  func.func @transform_2(%arg0: i32) -> (i32, i32) {
    %c0_i32 = arith.constant 0 : i32
    %c0_i32_0 = arith.constant 0 : i32
    %c0_i32_1 = arith.constant 0 : i32
    return %c0_i32, %c0_i32_0 : i32, i32
  }
  func.func @transform_3(%arg0: i32) -> (i32, i32) {
    %c0_i32 = arith.constant 0 : i32
    %c0_i32_0 = arith.constant 0 : i32
    return %c0_i32, %arg0 : i32, i32
  }
}

</mosaic_0001>

<bundles_post_ra>
// kernel: tpu_custom_call.1
= control target key start
LH: loop header
LB: loop body
LE: loop exit
PB: predicated region body
PF: predicated region fallthrough
CT: control target
= control target key end

     0   :  { %8 = vsyncpa [#allocation3], 0  ;;  %s672_s0 = inlined_call_operand.hbm [shape: f32[1,1024], index: 0, kind: input, shape index: {}]   ;;  %s673_s1 = inlined_call_operand.vmem [shape: f32[16,1], index: 1, kind: input, shape index: {}]   ;;  %s674_s2 = inlined_call_operand.vmem [shape: f32[16,16], index: 2, kind: input, shape index: {}]   ;;  %s675_s3 = inlined_call_operand.hbm [shape: f32[16,1024], index: 3, kind: output, shape index: {}]  }
   0x1   :  { %9 = vsyncpa [#allocation4], 0  ;;  %s602_s12 = smov [#allocation2]  }
   0x2   :  { %s16_s13 = sshll.u32 %s602_s12, 4  ;;  %s17_s13 = int_to_ptr.vmem [resolvable:$true] %s16_s13 }
   0x3   :  { %s566_s14 = scalar_lea.vmem %s17_s13, 128  ;;  %p571_p1 = scmp.lt.s32.totalorder %s17_s13, %s17_s13 }
   0x4   :  { %p567_p0 = scmp.ne.s32.totalorder %s17_s13, %s566_s14  ;;  %p572_p2 = scmp.lt.s32.totalorder %s566_s14, %s566_s14 }
   0x6   :  { %p573_p3 = por %p572_p2, %p571_p1 }
   0x8   :  { %p574_p4 = pnand %p573_p3, %p567_p0 }
   0xa   :  { %577 = shalt.err (!%p574_p4)
}
   0xb   :  { %19 = dma.hbm_to_vmem [thread:$0]  %s672_s0, 128, %s17_s13, [#allocation3]  }
   0xc   :  { %598 = dma.done.wait [#allocation3], 128  }
   0xd   :  { %599 = vsyncadd [#allocation3], 4294967168  ;;  %v603_v0 = vmov 0   ;;  %v29_v1 = vld [vmem:[%s673_s1 + $0x8] sm:$0xff]  ;;  %v28_v2 = vld [vmem:[%s673_s1] sm:$0xff]  ;;  %v604_v3 = vmov 0.0   ;;  %v31_v4 = vlaneseq }
   0xe   :  { %525 = vset.pattern.permute.xlu0 %v603_v0  ;;  %234 = vmatprep.mubr.f32.mxu0 %v604_v3  ;;  %v27_v9 = vld [vmem:[#allocation2] sm:$0xff]  ;;  %vm163_vm0 = vcmask 130048  }
   0xf   :  { %78 = vperm.xlu0 %525, %v29_v1   ;;  %311 = vmatprep.mubr.f32.mxu1 %v604_v3  ;;  %v32_v5 = vshrl.u32 %v31_v4, 7 }
  0x11   :  { %v33_v6 = vsub.s32 0, %v32_v5  ;;  %v41_v8 = vsub.s32 2, %v32_v5  ;;  %v37_v10 = vsub.s32 1, %v32_v5  ;;  %v45_v11 = vsub.s32 3, %v32_v5 }
  0x12   :  { %v49_v17 = vsub.s32 4, %v32_v5  ;;  %v53_v20 = vsub.s32 5, %v32_v5  ;;  %v61_v21 = vsub.s32 7, %v32_v5  ;;  %v57_v23 = vsub.s32 6, %v32_v5 }
  0x13   :  { %73 = vperm.xlu0 %525, %v28_v2   ;;  %v34_v12 = vrot.slane %v27_v9, %v33_v6  ;;  %v42_v14 = vrot.slane %v27_v9, %v41_v8  ;;  %v38_v15 = vrot.slane %v27_v9, %v37_v10  ;;  %v46_v19 = vrot.slane %v27_v9, %v45_v11 }
  0x14   :  { %v50_v25 = vrot.slane %v27_v9, %v49_v17  ;;  %v54_v29 = vrot.slane %v27_v9, %v53_v20  ;;  %v62_v32 = vrot.slane %v27_v9, %v61_v21  ;;  %v58_v35 = vrot.slane %v27_v9, %v57_v23 }
  0x8a   :  { %v79_v7 = vpop.permute.xlu0 %78 }
  0x8b   :  { %v90_v22 = vsub.f32 %v38_v15, %v79_v7  ;;  %v92_v28 = vsub.f32 %v46_v19, %v79_v7  ;;  %v89_v31 = vsub.f32 %v34_v12, %v79_v7  ;;  %v91_v34 = vsub.f32 %v42_v14, %v79_v7 }
  0x8c   :  { %v93_v38 = vsub.f32 %v50_v25, %v79_v7  ;;  %v94_v42 = vsub.f32 %v54_v29, %v79_v7  ;;  %v96_v45 = vsub.f32 %v62_v32, %v79_v7  ;;  %v95_v49 = vsub.f32 %v58_v35, %v79_v7 }
  0x8d   :  { %v106_v33 = vand.u32 2147483647, %v90_v22  ;;  %v108_v41 = vand.u32 2147483647, %v92_v28  ;;  %v105_v44 = vand.u32 2147483647, %v89_v31 }
  0x8e   :  { %v639_v13 = vpop.permute.xlu0 %73  ;;  %v107_v48 = vand.u32 2147483647, %v91_v34  ;;  %v109_v54 = vand.u32 2147483647, %v93_v38  ;;  %v110_v58 = vand.u32 2147483647, %v94_v42 }
  0x8f   :  { %v81_v16 = vsub.f32 %v34_v12, %v639_v13  ;;  %v83_v18 = vsub.f32 %v42_v14, %v639_v13  ;;  %v82_v27 = vsub.f32 %v38_v15, %v639_v13  ;;  %v84_v30 = vsub.f32 %v46_v19, %v639_v13  ;;  %v161_v34 = vld [vmem:[%s674_s2] sm:$0xff] }
  0x90   :  { %v86_v36 = vsub.f32 %v54_v29, %v639_v13  ;;  %v122_v47 = vsub.f32 0.0, %v106_v33  ;;  %v88_v53 = vsub.f32 %v62_v32, %v639_v13  ;;  %v124_v56 = vsub.f32 0.0, %v108_v41  ;;  %v162_v41 = vld [vmem:[%s674_s2 + $0x8] sm:$0xff]  ;;  %s605_s2 = smov [#allocation5]  }
  0x91   :  { %v97_v24 = vand.u32 2147483647, %v81_v16  ;;  %v99_v26 = vand.u32 2147483647, %v83_v18  ;;  %v98_v40 = vand.u32 2147483647, %v82_v27  ;;  %v85_v57 = vsub.f32 %v50_v25, %v639_v13 }
  0x92   :  { %v100_v43 = vand.u32 2147483647, %v84_v30  ;;  %v102_v50 = vand.u32 2147483647, %v86_v36  ;;  %v121_v60 = vsub.f32 0.0, %v105_v44  ;;  %v87_v61 = vsub.f32 %v58_v35, %v639_v13  ;;  %s499_s23 = sshll.u32 %s605_s2, 4  ;;  %s500_s23 = int_to_ptr.vmem [resolvable:$true] %s499_s23 }
  0x93   :  { %v113_v37 = vsub.f32 0.0, %v97_v24  ;;  %v115_v39 = vsub.f32 0.0, %v99_v26  ;;  %v114_v46 = vsub.f32 0.0, %v98_v40  ;;  %v112_v62 = vand.u32 2147483647, %v96_v45  ;;  %s578_s24 = scalar_lea.vmem %s500_s23, 2048  ;;  %p583_p6 = scmp.lt.s32.totalorder %s500_s23, %s500_s23 }
  0x94   :  { %v116_v52 = vsub.f32 0.0, %v100_v43  ;;  %v147_v63 = vmul.f32 1.442695, %v122_v47  ;;  %v123_v0 = vsub.f32 0.0, %v107_v48  ;;  %v111_v1 = vand.u32 2147483647, %v95_v49  ;;  %p579_p5 = scmp.ne.s32.totalorder %s500_s23, %s578_s24  ;;  %p584_p7 = scmp.lt.s32.totalorder %s578_s24, %s578_s24 }
  0x95   :  { %v129_v51 = vmul.f32 1.442695, %v113_v37  ;;  %v133_v55 = vmul.f32 1.442695, %v115_v39  ;;  %v131_v59 = vmul.f32 1.442695, %v114_v46 }
  0x96   :  { %v118_v2 = vsub.f32 0.0, %v102_v50  ;;  %v135_v4 = vmul.f32 1.442695, %v116_v52  ;;  %v104_v5 = vand.u32 2147483647, %v88_v53  ;;  %v125_v6 = vsub.f32 0.0, %v109_v54  ;;  %p585_p8 = por %p584_p7, %p583_p6 }
  0x97   :  { %526 = vpow2.f32 %v129_v51  ;;  %v151_v7 = vmul.f32 1.442695, %v124_v56  ;;  %v101_v8 = vand.u32 2147483647, %v85_v57  ;;  %v126_v9 = vsub.f32 0.0, %v110_v58 }
  0x98   :  { %528 = vpow2.f32 %v133_v55  ;;  %v145_v10 = vmul.f32 1.442695, %v121_v60  ;;  %v103_v11 = vand.u32 2147483647, %v87_v61  ;;  %v128_v12 = vsub.f32 0.0, %v112_v62  ;;  %p586_p9 = pnand %p585_p8, %p579_p5 }
  0x99   :  { %530 = vpow2.f32 %v131_v59  ;;  %v149_v14 = vmul.f32 1.442695, %v123_v0  ;;  %v127_v13 = vsub.f32 0.0, %v111_v1  ;;  %v139_v15 = vmul.f32 1.442695, %v118_v2 }
  0x9a   :  { %532 = vpow2.f32 %v147_v63  ;;  %v120_v16 = vsub.f32 0.0, %v104_v5  ;;  %v153_v17 = vmul.f32 1.442695, %v125_v6  ;;  %v117_v18 = vsub.f32 0.0, %v101_v8 }
  0x9b   :  { %534 = vpow2.f32 %v135_v4  ;;  %v155_v19 = vmul.f32 1.442695, %v126_v9  ;;  %v119_v20 = vsub.f32 0.0, %v103_v11  ;;  %v159_v21 = vmul.f32 1.442695, %v128_v12 }
  0x9c   :  { %536 = vpow2.f32 %v151_v7  ;;  %v157_v22 = vmul.f32 1.442695, %v127_v13  ;;  %v143_v23 = vmul.f32 1.442695, %v120_v16  ;;  %v137_v24 = vmul.f32 1.442695, %v117_v18 }
  0x9d   :  { %538 = vpow2.f32 %v145_v10  ;;  %v141_v25 = vmul.f32 1.442695, %v119_v20 }
  0x9e   :  { %540 = vpow2.f32 %v149_v14 }
  0x9f   :  { %542 = vpow2.f32 %v139_v15 }
  0xa0   :  { %544 = vpow2.f32 %v153_v17 }
  0xa1   :  { %546 = vpow2.f32 %v155_v19 }
  0xa2   :  { %548 = vpow2.f32 %v159_v21 }
  0xa3   :  { %550 = vpow2.f32 %v157_v22 }
  0xa4   :  { %v527_v26 = vpop.eup %526  ;;  %552 = vpow2.f32 %v143_v23 }
  0xa5   :  { %v529_v27 = vpop.eup %528  ;;  %554 = vpow2.f32 %v137_v24 }
  0xa6   :  { %v531_v28 = vpop.eup %530  ;;  %556 = vpow2.f32 %v141_v25 }
  0xa7   :  { %v533_v29 = vpop.eup %532 }
  0xa8   :  { %v535_v30 = vpop.eup %534  ;;  %198 = vmatprep.subr.mxu0 %v533_v29 }
  0xa9   :  { %v537_v31 = vpop.eup %536 }
  0xaa   :  { %v539_v32 = vpop.eup %538  ;;  %275 = vmatprep.subr.mxu1 %v537_v31 }
  0xab   :  { %v541_v33 = vpop.eup %540  ;;  %199 = vmatpush1.msra.mxu0 %v539_v32 }
  0xac   :  { %v543_v35 = vpop.eup %542  ;;  %276 = vmatpush1.msra.mxu1 %v541_v33  ;;  %200 = vmatprep.subr.mxu0 %v531_v28 }
  0xad   :  { %v545_v36 = vpop.eup %544  ;;  %277 = vmatprep.subr.mxu1 %v535_v30  ;;  %201 = vmatpush1.msra.mxu0 %v527_v26 }
  0xae   :  { %v547_v37 = vpop.eup %546  ;;  %278 = vmatpush1.msra.mxu1 %v529_v27  ;;  %511 = vmatmul.mubr.msk.f32.vlgmr.msra.gmra.mxu0 %vm163_vm0, %v161_v34 }
  0xaf   :  { %v549_v38 = vpop.eup %548  ;;  %513 = vmatmul.mubr.msk.f32.vlgmr.msra.gmra.mxu1 %vm163_vm0, %v161_v34  ;;  %352 = vmatprep.subr.mxu0 %v547_v37 }
  0xb0   :  { %v551_v39 = vpop.eup %550  ;;  %429 = vmatprep.subr.mxu1 %v549_v38  ;;  %353 = vmatpush1.msra.mxu0 %v545_v36 }
  0xb1   :  { %v553_v40 = vpop.eup %552  ;;  %430 = vmatpush1.msra.mxu1 %v551_v39  ;;  %354 = vmatprep.subr.mxu0 %v543_v35 }
  0xb2   :  { %v555_v42 = vpop.eup %554  ;;  %431 = vmatprep.subr.mxu1 %v553_v40  ;;  %240 = vmatprep.mubr.f32.mxu0 %v604_v3 }
  0xb3   :  { %v557_v43 = vpop.eup %556  ;;  %317 = vmatprep.mubr.f32.mxu1 %v604_v3  ;;  %355 = vmatpush1.msra.mxu0 %v555_v42 }
  0xb4   :  { %432 = vmatpush1.msra.mxu1 %v557_v43  ;;  %512 = vmatmul.mubr.msk.f32.gmra.mxu0 %vm163_vm0, %v162_v41 }
  0xb5   :  { %514 = vmatmul.mubr.msk.f32.gmra.mxu1 %vm163_vm0, %v162_v41  ;;  %388 = vmatprep.mubr.f32.mxu0 %v604_v3 }
  0xb6   :  { %465 = vmatprep.mubr.f32.mxu1 %v604_v3 }
  0xb8   :  { %515 = vmatmul.mubr.msk.f32.vlgmr.msra.gmra.mxu0 %vm163_vm0, %v161_v34 }
  0xb9   :  { %517 = vmatmul.mubr.msk.f32.vlgmr.msra.gmra.mxu1 %vm163_vm0, %v161_v34  ;;  %394 = vmatprep.mubr.f32.mxu0 %v604_v3 }
  0xba   :  { %471 = vmatprep.mubr.f32.mxu1 %v604_v3 }
  0xbc   :  { %516 = vmatmul.mubr.msk.f32.gmra.mxu0 %vm163_vm0, %v162_v41 }
  0xbd   :  { %518 = vmatmul.mubr.msk.f32.gmra.mxu1 %vm163_vm0, %v162_v41 }
 0x16e   :  { %v236_v44 = vpop.f32.mrf.mxu0 }
 0x16f   :  { %478 = vst [vmem:[#allocation5] sm:$0xff] %v236_v44  ;;  %v313_v45 = vpop.f32.mrf.mxu1 }
 0x170   :  { %480 = vst [vmem:[#allocation5 + $0x10] sm:$0xff] %v313_v45  ;;  %v238_v46 = vpop.f32.mrf.mxu0 }
 0x171   :  { %479 = vst [vmem:[#allocation5 + $0x8] sm:$0xff] %v238_v46  ;;  %v315_v47 = vpop.f32.mrf.mxu1 }
 0x172   :  { %481 = vst [vmem:[#allocation5 + $0x18] sm:$0xff] %v315_v47 }
 0x174   :  { %v242_v48 = vpop.f32.mrf.mxu0 }
 0x175   :  { %486 = vst [vmem:[#allocation5 + $0x40] sm:$0xff] %v242_v48  ;;  %v319_v49 = vpop.f32.mrf.mxu1 }
 0x176   :  { %488 = vst [vmem:[#allocation5 + $0x50] sm:$0xff] %v319_v49  ;;  %v244_v50 = vpop.f32.mrf.mxu0 }
 0x177   :  { %487 = vst [vmem:[#allocation5 + $0x48] sm:$0xff] %v244_v50  ;;  %v321_v51 = vpop.f32.mrf.mxu1 }
 0x178   :  { %489 = vst [vmem:[#allocation5 + $0x58] sm:$0xff] %v321_v51  ;;  %v390_v3 = vpop.f32.mrf.mxu0 }
 0x179   :  { %482 = vst [vmem:[#allocation5 + $0x20] sm:$0xff] %v390_v3  ;;  %v467_v52 = vpop.f32.mrf.mxu1 }
 0x17a   :  { %484 = vst [vmem:[#allocation5 + $0x30] sm:$0xff] %v467_v52  ;;  %v392_v53 = vpop.f32.mrf.mxu0 }
 0x17b   :  { %483 = vst [vmem:[#allocation5 + $0x28] sm:$0xff] %v392_v53  ;;  %v469_v54 = vpop.f32.mrf.mxu1 }
 0x17c   :  { %485 = vst [vmem:[#allocation5 + $0x38] sm:$0xff] %v469_v54  ;;  %v396_v55 = vpop.f32.mrf.mxu0 }
 0x17d   :  { %490 = vst [vmem:[#allocation5 + $0x60] sm:$0xff] %v396_v55  ;;  %v473_v56 = vpop.f32.mrf.mxu1 }
 0x17e   :  { %492 = vst [vmem:[#allocation5 + $0x70] sm:$0xff] %v473_v56  ;;  %v398_v57 = vpop.f32.mrf.mxu0 }
 0x17f   :  { %491 = vst [vmem:[#allocation5 + $0x68] sm:$0xff] %v398_v57  ;;  %v475_v58 = vpop.f32.mrf.mxu1 }
 0x180   :  { %493 = vst [vmem:[#allocation5 + $0x78] sm:$0xff] %v475_v58 }
 0x181   :  { %589 = shalt.err (!%p586_p9)
}
 0x182   :  { %s606_s25 = smov 1024   ;;  %s607_s26 = smov 64  }
 0x183   :  { %505 = dma.vmem_to_hbm [thread:$0]  %s500_s23, 2048, %s675_s3, [#allocation4], %s606_s25, %s606_s25, %s607_s26  }
 0x184   :  { %600 = dma.done.wait [#allocation4], 2048  }
 0x185   :  { %601 = vsyncadd [#allocation4], 4294965248 }
 0x186   :  { %509 = vsyncpa [#allocation3], 1 }
 0x187   :  { %510 = vsyncpa [#allocation4], 1 }

</bundles_post_ra>
